<compile_context>
chip_gen: v7x
topology: tpu7x:2x2x1
jax: 0.10.0
libtpu: 0.0.40
codegen_flags: <defaults>
</compile_context>

<pallas_src>
import math

import jax
import jax.numpy as jnp
import numpy as np
from jax.experimental import pallas as pl
from jax.experimental.pallas import tpu as pltpu


def _cdiv(a, b):
    return (a + b - 1) // b


def _round_up(a, b):
    return _cdiv(a, b) * b


_MAX_TILE_D = 8192                       # lanes per tile (multiple of 128)
_FALLBACK_VMEM_CAP = 64 * 1024 * 1024    # assume v7x-sized VMEM if the query fails


def _vmem_capacity_bytes():
    try:
        return int(pltpu.get_tpu_info().vmem_capacity_bytes)
    except Exception:
        return _FALLBACK_VMEM_CAP


def _num_tensorcores():
    # v4 / v5p (megacore) and v7x shard 'parallel' grid axes across 2 TensorCores;
    # v5e / v6e have a single TC.  Detection failure is harmless (perf-only).
    try:
        kind = getattr(jax.devices()[0], "device_kind", "").lower()
        if ("v7" in kind) or ("7x" in kind) or ("v4" in kind) or ("v5p" in kind):
            return 2
    except Exception:
        pass
    return 1


def _make_kernel(tile_d, multi_j):
    def kernel(x_ref, y_ref, c1_ref, o_ref):
        # out = x * C1 + y, computed/stored in float32 (matches torch's .float()).
        x = x_ref[...].astype(jnp.float32)
        y = y_ref[...].astype(jnp.float32)
        if multi_j:
            j = pl.program_id(1)
            start = pl.multiple_of(j * tile_d, 128)
            c1 = c1_ref[:, pl.ds(start, tile_d)].astype(jnp.float32)
        else:
            c1 = c1_ref[...].astype(jnp.float32)
        o_ref[...] = x * c1 + y          # [1, tile_d] broadcasts over the rows
    return kernel


def semantic_aug_cal(x, y, c1, *, tile_b=None, tile_d=None):
    """x: [B, D], y: [B, D], c1: [D]  ->  float32 [B, D].

    Equivalent to torch: (x * C1 + y).float()
    """
    B, D = x.shape
    assert y.shape == (B, D) and c1.shape == (D,)

    ix = jnp.dtype(x.dtype).itemsize
    iy = jnp.dtype(y.dtype).itemsize
    # Sublane packing granularity: 8 rows/vreg for f32, 16 for bf16/fp16.
    align = 8 * max(1, 4 // min(ix, iy))

    # ---- lane-axis layout ---------------------------------------------------
    reshaped = False
    if D % 128 == 0:
        B_eff, D_eff = B, D
        x_eff, y_eff, c1_eff = x, y, c1
    else:
        k = 128 // math.gcd(D, 128)
        if B % k == 0 and B >= k:
            # Free layout trick: fold k rows into one lane-dense row so every
            # store is an unmasked vst and no padding of x / y is needed.
            reshaped = True
            B_eff, D_eff = B // k, D * k
            x_eff = x.reshape(B_eff, D_eff)
            y_eff = y.reshape(B_eff, D_eff)
            c1_eff = jnp.tile(c1, k)
        else:
            # Ragged lane axis: use the full D as the lane block (legal because
            # it equals the array dim); edge stores are lane-masked, but there is
            # no extra HBM pass for padding.
            B_eff, D_eff = B, D
            x_eff, y_eff, c1_eff = x, y, c1

    # ---- lane (D) tile ------------------------------------------------------
    if tile_d is None:
        if D_eff % 128 == 0 and D_eff > _MAX_TILE_D:
            tile_d = 128
            for m in range(_MAX_TILE_D // 128, 0, -1):
                if D_eff % (m * 128) == 0:
                    tile_d = m * 128
                    break
        else:
            tile_d = D_eff
    assert D_eff % tile_d == 0
    grid_j = D_eff // tile_d

    # ---- batch (B) tile: biggest that fits ~half of VMEM (double-buffered) ---
    vmem_cap = _vmem_capacity_bytes()
    budget = vmem_cap // 2                    # ~32 MiB on v7x, ~64 MiB on v5e/v6e
    bytes_per_row = tile_d * (ix + iy + 4)    # x + y in, f32 out
    n_cores = _num_tensorcores()
    if tile_b is None:
        tile_b = budget // (2 * bytes_per_row)          # 2x: double buffering
        tile_b = max(align, (tile_b // align) * align)
        tile_b = min(tile_b, _round_up(B_eff, align))
        if n_cores >= 2:
            grid_b = _cdiv(B_eff, tile_b)
            if grid_b * grid_j < 2 and B_eff >= 2 * align:
                # Give the second TensorCore something to do.
                tile_b = _round_up(_cdiv(B_eff, 2), align)
            elif grid_b > 1 and grid_b % 2 == 1:
                # Balance the 'parallel' batch axis evenly across the two cores.
                tile_b = max(align, _round_up(_cdiv(B_eff, grid_b + 1), align))
    assert tile_b % align == 0, f"tile_b must be a multiple of {align}"
    grid_b = _cdiv(B_eff, tile_b)
    grid = (grid_b, grid_j)

    c1_2d = c1_eff.reshape(1, D_eff)

    # ---- scoped VMEM limit: actual double-buffered footprint + headroom ------
    footprint = (2 * tile_b * tile_d * (ix + iy + 4)
                 + 2 * D_eff * jnp.dtype(c1_2d.dtype).itemsize)
    vmem_limit = int(max(16 * 1024 * 1024,
                         min(vmem_cap * 3 // 4, footprint + 4 * 1024 * 1024)))

    cost = pl.CostEstimate(
        flops=2 * B * D,
        transcendentals=0,
        bytes_accessed=B * D * (ix + iy + 4) + D * jnp.dtype(c1.dtype).itemsize,
    )

    out = pl.pallas_call(
        _make_kernel(tile_d, grid_j > 1),
        out_shape=jax.ShapeDtypeStruct((B_eff, D_eff), jnp.float32),
        grid_spec=pltpu.PrefetchScalarGridSpec(
            num_scalar_prefetch=0,
            grid=grid,
            in_specs=[
                pl.BlockSpec((tile_b, tile_d), lambda i, j: (i, j)),   # x tile
                pl.BlockSpec((tile_b, tile_d), lambda i, j: (i, j)),   # y tile
                pl.BlockSpec((1, D_eff), lambda i, j: (0, 0)),         # C1, resident
            ],
            out_specs=pl.BlockSpec((tile_b, tile_d), lambda i, j: (i, j)),
        ),
        compiler_params=pltpu.CompilerParams(
            dimension_semantics=("parallel", "parallel"),
            vmem_limit_bytes=vmem_limit,
        ),
        cost_estimate=cost,
    )(x_eff, y_eff, c1_2d)

    if reshaped:
        out = out.reshape(B, D)
    return out


if __name__ == "__main__":
    key = jax.random.PRNGKey(0)
    kx, ky, kc, kx2, ky2, kc2, kx3, ky3, kc3 = jax.random.split(key, 9)
    p = 0.95

    # --- case 1: aligned shapes, float32 (CLIP-ish conditional dim) ----------
    B, cond_dim = 16, 128
    x = jax.random.normal(kx, (B, cond_dim), dtype=jnp.float32)
    y = jax.random.normal(ky, (B, cond_dim), dtype=jnp.float32)
    # Synthetic C matrix -> diagonal * p, mirroring:
    #   C1 = torch.diagonal(torch.from_numpy(c.reshape(D, D)) * p)
    # TODO(synk): the real module loads c_text_true_given_image_true.npy from
    # disk; synthesized here to stay self-contained.
    c_mat = jax.random.uniform(kc, (cond_dim, cond_dim), dtype=jnp.float32)
    C1 = jnp.diagonal(c_mat * p)

    out = jax.block_until_ready(semantic_aug_cal(x, y, C1))
    ref = (x * C1 + y).astype(jnp.float32)
    np.testing.assert_allclose(np.asarray(out), np.asarray(ref),
                               rtol=1e-6, atol=1e-6)
    assert out.shape == (B, cond_dim) and out.dtype == jnp.float32

    # --- case 2: unaligned B/D + bf16 inputs -> ragged edge-block path -------
    B2, D2 = 10, 96
    x2 = jax.random.normal(kx2, (B2, D2), dtype=jnp.bfloat16)
    y2 = jax.random.normal(ky2, (B2, D2), dtype=jnp.bfloat16)
    c_mat2 = jax.random.uniform(kc2, (D2, D2), dtype=jnp.float32)
    C1_2 = jnp.diagonal(c_mat2 * p)

    out2 = jax.block_until_ready(semantic_aug_cal(x2, y2, C1_2))
    ref2 = x2.astype(jnp.float32) * C1_2 + y2.astype(jnp.float32)
    np.testing.assert_allclose(np.asarray(out2), np.asarray(ref2),
                               rtol=1e-5, atol=1e-5)
    assert out2.shape == (B2, D2) and out2.dtype == jnp.float32

    # --- case 3: unaligned D, B % k == 0 -> lane-dense reshape path ----------
    B3, D3 = 12, 96
    x3 = jax.random.normal(kx3, (B3, D3), dtype=jnp.float32)
    y3 = jax.random.normal(ky3, (B3, D3), dtype=jnp.float32)
    c_mat3 = jax.random.uniform(kc3, (D3, D3), dtype=jnp.float32)
    C1_3 = jnp.diagonal(c_mat3 * p)

    out3 = jax.block_until_ready(semantic_aug_cal(x3, y3, C1_3))
    ref3 = (x3 * C1_3 + y3).astype(jnp.float32)
    np.testing.assert_allclose(np.asarray(out3), np.asarray(ref3),
                               rtol=1e-6, atol=1e-6)
    assert out3.shape == (B3, D3) and out3.dtype == jnp.float32

    print("KERNEL_OK")
</pallas_src>

<mosaic_0001>
module attributes {stable_mosaic.version = 11 : i64} {
  func.func @kernel(%arg0: i32, %arg1: i32, %arg2: memref<16x128xf32, #tpu.memory_space<vmem>>, %arg3: memref<16x128xf32, #tpu.memory_space<vmem>>, %arg4: memref<1x128xf32, #tpu.memory_space<vmem>>, %arg5: memref<16x128xf32, #tpu.memory_space<vmem>>) attributes {dimension_semantics = [#tpu.dimension_semantics<parallel>, #tpu.dimension_semantics<parallel>], iteration_bounds = array<i64: 1, 1>, scalar_prefetch = 0 : i64, scratch_operands = 0 : i64, tpu.core_type = #tpu.core_type<tc>, window_params = [{transform_indices = @transform_0, window_bounds = array<i64: 16, 128>}, {transform_indices = @transform_1, window_bounds = array<i64: 16, 128>}, {pipeline_mode = #tpu.pipeline_mode<synchronous>, transform_indices = @transform_2, window_bounds = array<i64: 1, 128>}, {transform_indices = @transform_3, window_bounds = array<i64: 16, 128>}]} {
    %c0 = arith.constant 0 : index
    %c0_0 = arith.constant 0 : index
    %0 = vector.load %arg2[%c0, %c0_0] : memref<16x128xf32, #tpu.memory_space<vmem>>, vector<16x128xf32>
    %c0_1 = arith.constant 0 : index
    %c0_2 = arith.constant 0 : index
    %1 = vector.load %arg3[%c0_1, %c0_2] : memref<16x128xf32, #tpu.memory_space<vmem>>, vector<16x128xf32>
    %c0_3 = arith.constant 0 : index
    %c0_4 = arith.constant 0 : index
    %2 = vector.load %arg4[%c0_3, %c0_4] : memref<1x128xf32, #tpu.memory_space<vmem>>, vector<1x128xf32>
    %3 = vector.broadcast %2 : vector<1x128xf32> to vector<16x128xf32>
    %4 = arith.mulf %0, %3 : vector<16x128xf32>
    %5 = arith.addf %4, %1 : vector<16x128xf32>
    %c0_5 = arith.constant 0 : index
    %c0_6 = arith.constant 0 : index
    %6 = vector.load %arg5[%c0_5, %c0_6] : memref<16x128xf32, #tpu.memory_space<vmem>>, vector<16x128xf32>
    tpu.vector_store %arg5[%c0_5, %c0_6], %5 {strides = array<i32>} : memref<16x128xf32, #tpu.memory_space<vmem>>, vector<16x128xf32>,
    return
  }
  func.func @transform_0(%arg0: i32, %arg1: i32) -> (i32, i32) {
    %c0_i32 = arith.constant 0 : i32
    return %arg0, %arg1 : i32, i32
  }
  func.func @transform_1(%arg0: i32, %arg1: i32) -> (i32, i32) {
    %c0_i32 = arith.constant 0 : i32
    return %arg0, %arg1 : i32, i32
  }
  func.func @transform_2(%arg0: i32, %arg1: i32) -> (i32, i32) {
    %c0_i32 = arith.constant 0 : i32
    %c0_i32_0 = arith.constant 0 : i32
    %c0_i32_1 = arith.constant 0 : i32
    return %c0_i32, %c0_i32_0 : i32, i32
  }
  func.func @transform_3(%arg0: i32, %arg1: i32) -> (i32, i32) {
    %c0_i32 = arith.constant 0 : i32
    return %arg0, %arg1 : i32, i32
  }
}

</mosaic_0001>

<bundles_post_ra>
// kernel: tpu_custom_call.1
= control target key start
LH: loop header
LB: loop body
LE: loop exit
PB: predicated region body
PF: predicated region fallthrough
CT: control target
= control target key end

     0   :  { %8 = vsyncpa [#allocation3], 0  ;;  %s229_s0 = inlined_call_operand.hbm [shape: f32[16,128], index: 0, kind: input, shape index: {}]   ;;  %s230_s1 = inlined_call_operand.hbm [shape: f32[16,128], index: 1, kind: input, shape index: {}]   ;;  %s231_s2 = inlined_call_operand.vmem [shape: f32[1,128], index: 2, kind: input, shape index: {}]   ;;  %s232_s3 = inlined_call_operand.hbm [shape: f32[16,128], index: 3, kind: output, shape index: {}]  }
   0x1   :  { %9 = vsyncpa [#allocation6], 0 }
   0x2   :  { %10 = vsyncpa [#allocation4], 0  ;;  %s156_s12 = smov [#allocation2]   ;;  %s84_s16 = scalar_lea.hbm %s229_s0, 256 }
   0x3   :  { %s16_s13 = sshll.u32 %s156_s12, 4  ;;  %p85_p0 = scmp.ne.s32.totalorder %s229_s0, %s84_s16  ;;  %s17_s13 = int_to_ptr.vmem [resolvable:$true] %s16_s13 }
   0x4   :  { %p88_p1 = scmp.lt.u32.totalorder %s84_s16, %s229_s0 }
   0x6   :  { %p90_p2 = pnand %p88_p1, %p85_p0 }
   0x8   :  { %93 = shalt.err (!%p90_p2)
}
   0x9   :  { %s94_s21 = scalar_lea.vmem %s17_s13, 256  ;;  %p99_p4 = scmp.lt.s32.totalorder %s17_s13, %s17_s13 }
   0xa   :  { %p95_p3 = scmp.ne.s32.totalorder %s17_s13, %s94_s21  ;;  %p100_p5 = scmp.lt.s32.totalorder %s94_s21, %s94_s21 }
   0xc   :  { %p101_p6 = por %p100_p5, %p99_p4 }
   0xe   :  { %p102_p7 = pnand %p101_p6, %p95_p3 }
  0x10   :  { %105 = shalt.err (!%p102_p7)
}
  0x11   :  { %s157_s22 = smov 128   ;;  %s158_s23 = smov 8  }
  0x12   :  { %22 = dma.hbm_to_vmem [thread:$0]  %s229_s0, 256, %s17_s13, [#allocation3], %s157_s22, %s157_s22, %s158_s23  }
  0x13   :  { %s159_s26 = smov [#allocation5]   ;;  %s106_s30 = scalar_lea.hbm %s230_s1, 256 }
  0x14   :  { %s28_s27 = sshll.u32 %s159_s26, 4  ;;  %p107_p8 = scmp.ne.s32.totalorder %s230_s1, %s106_s30  ;;  %s29_s27 = int_to_ptr.vmem [resolvable:$true] %s28_s27 }
  0x15   :  { %p110_p9 = scmp.lt.u32.totalorder %s106_s30, %s230_s1 }
  0x17   :  { %p112_p10 = pnand %p110_p9, %p107_p8 }
  0x19   :  { %115 = shalt.err (!%p112_p10)
}
  0x1a   :  { %s116_s8 = scalar_lea.vmem %s29_s27, 256  ;;  %p121_p12 = scmp.lt.s32.totalorder %s29_s27, %s29_s27 }
  0x1b   :  { %p117_p11 = scmp.ne.s32.totalorder %s29_s27, %s116_s8  ;;  %p122_p13 = scmp.lt.s32.totalorder %s116_s8, %s116_s8 }
  0x1d   :  { %p123_p0 = por %p122_p13, %p121_p12 }
  0x1f   :  { %p124_p1 = pnand %p123_p0, %p117_p11 }
  0x21   :  { %127 = shalt.err (!%p124_p1)
}
  0x22   :  { %34 = dma.hbm_to_vmem [thread:$0]  %s230_s1, 256, %s29_s27, [#allocation6], %s157_s22, %s157_s22, %s158_s23  }
  0x23   :  { %150 = dma.done.wait [#allocation3], 256  }
  0x24   :  { %151 = vsyncadd [#allocation3], 4294967040 }
  0x25   :  { %152 = dma.done.wait [#allocation6], 256  }
  0x26   :  { %153 = vsyncadd [#allocation6], 4294967040  ;;  %v43_v0 = vld [vmem:[#allocation2] sm:$0xff]  ;;  %v45_v1 = vld [vmem:[#allocation5] sm:$0xff]  ;;  %s160_s12 = smov [#allocation7]  }
  0x27   :  { %v78_v2 = vld [vmem:[%s231_s2] ss:$0 sm:$0xff]  ;;  %v44_v4 = vld [vmem:[#allocation2 + $0x8] sm:$0xff]  ;;  %v46_v5 = vld [vmem:[#allocation5 + $0x8] sm:$0xff]  ;;  %s65_s13 = sshll.u32 %s160_s12, 4  ;;  %s66_s13 = int_to_ptr.vmem [resolvable:$true] %s65_s13 }
  0x28   :  { %v54_v3 = vmul.f32 %v78_v2, %v43_v0  ;;  %v55_v6 = vmul.f32 %v78_v2, %v44_v4  ;;  %s128_s1 = scalar_lea.vmem %s66_s13, 256  ;;  %p133_p3 = scmp.lt.s32.totalorder %s66_s13, %s66_s13 }
  0x29   :  { %p129_p2 = scmp.ne.s32.totalorder %s66_s13, %s128_s1  ;;  %p134_p4 = scmp.lt.s32.totalorder %s128_s1, %s128_s1 }
  0x2a   :  { %v56_v7 = vadd.f32 %v54_v3, %v45_v1  ;;  %v57_v8 = vadd.f32 %v55_v6, %v46_v5 }
  0x2b   :  { %p135_p5 = por %p134_p4, %p133_p3 }
  0x2c   :  { %58 = vst [vmem:[#allocation7] sm:$0xff] %v56_v7  ;;  %59 = vst [vmem:[#allocation7 + $0x8] sm:$0xff] %v57_v8 }
  0x2d   :  { %p136_p6 = pnand %p135_p5, %p129_p2 }
  0x2f   :  { %139 = shalt.err (!%p136_p6)
}
  0x30   :  { %s140_s15 = scalar_lea.hbm %s232_s3, 256 }
  0x31   :  { %p141_p7 = scmp.ne.s32.totalorder %s232_s3, %s140_s15  ;;  %p144_p8 = scmp.lt.u32.totalorder %s140_s15, %s232_s3 }
  0x33   :  { %p146_p9 = pnand %p144_p8, %p141_p7 }
  0x35   :  { %149 = shalt.err (!%p146_p9)
}
  0x36   :  { %71 = dma.vmem_to_hbm [thread:$0]  %s66_s13, 256, %s232_s3, [#allocation4], %s157_s22, %s157_s22, %s158_s23  }
  0x37   :  { %154 = dma.done.wait [#allocation4], 256  }
  0x38   :  { %155 = vsyncadd [#allocation4], 4294967040 }
  0x39   :  { %75 = vsyncpa [#allocation3], 1 }
  0x3a   :  { %76 = vsyncpa [#allocation6], 1 }
  0x3b   :  { %77 = vsyncpa [#allocation4], 1 }

</bundles_post_ra>
